<compile_context>
chip_gen: v5e
topology: v5e:2x2
jax: 0.10.0
libtpu: 0.0.40
codegen_flags: <defaults>
</compile_context>

<pallas_src>
import jax
import jax.numpy as jnp
from jax import lax
from jax.experimental import pallas as pl
from jax.experimental.pallas import tpu as pltpu

HIDDEN = 128
_TARGET_X_BLOCK_BYTES = 2 << 20   # ~2 MiB of f32 x per grid step
_MAX_BATCH_TILE = 8192


def _round_up(n: int, m: int) -> int:
    return ((n + m - 1) // m) * m


def _cdiv(n: int, m: int) -> int:
    return (n + m - 1) // m


def _pick_batch_tile(B: int, D: int, b_tile=None) -> int:
    """Pick the batch tile: ~2 MiB of x per grid step, lane/sublane aligned."""
    if b_tile is not None:
        bt = int(b_tile)
    else:
        bt = _TARGET_X_BLOCK_BYTES // (D * 4)
        if 512 < B <= bt:          # keep >= 2 grid steps so v7x can use both TCs
            bt = _cdiv(B, 2)
    bt = max(128, min(bt, _MAX_BATCH_TILE))
    bt = _round_up(bt, 128)        # lane-dense output blocks; sublane-aligned x
    if bt >= B:                    # single full-extent block (legal for any B)
        bt = B
    return bt


def _mlp_kernel(x_ref, w1_ref, b1_ref, w2_ref, b2_ref, o_ref):
    # fc1 on the MXU: cast the streamed f32 tile to bf16 in-register (VPU, hidden).
    x = x_ref[...].astype(jnp.bfloat16)
    h = jnp.dot(x, w1_ref[...], preferred_element_type=jnp.float32)     # (bt, 128)
    h = jnp.maximum(h + b1_ref[...], 0.0)                               # bias + ReLU
    # fc2 (output dim 1): contract w2 (8,128) with h (bt,128) on the idle MXU
    # ("NT" dot, same dimension numbers as q @ k.T) -> (8, bt); only row 0 of
    # w2_ref holds real weights.  This makes the result lane-dense so the output
    # stores / writeback DMA are unmasked.
    yy = lax.dot_general(w2_ref[...], h, (((1,), (1,)), ((), ())),
                         preferred_element_type=jnp.float32)            # (8, bt)
    y = yy[0:1, :] + b2_ref[0, 0]                                       # (1, bt)
    # sigmoid: exp + approximate reciprocal both run on the otherwise idle EUP.
    o_ref[...] = pl.reciprocal(1.0 + jnp.exp(-y), approx=True).astype(o_ref.dtype)


def domain_graph_classifier(x, fc1_w, fc1_b, fc2_w, fc2_b, *, b_tile=None):
    """Fused forward pass of DomainGraphClassifier.

    PyTorch nn.Linear layout:
      x     : (B, D) float32
      fc1_w : (128, D), fc1_b : (128,)
      fc2_w : (1, 128), fc2_b : (1,)
    Returns (B, 1) float32 probabilities.
    """
    B, D = x.shape
    assert fc1_w.shape == (HIDDEN, D) and fc2_w.shape == (1, HIDDEN)

    # Parameters are tiny: prepare once.  W1 in bf16 (MXU rhs), the rest f32.
    w1 = fc1_w.T.astype(jnp.bfloat16)                                   # (D, 128)
    b1 = fc1_b.reshape(1, HIDDEN).astype(jnp.float32)
    w2 = jnp.zeros((8, HIDDEN), jnp.float32).at[0].set(
        fc2_w.reshape(HIDDEN).astype(jnp.float32))                      # row 0 = fc2_w
    b2 = fc2_b.reshape(1, 1).astype(jnp.float32)                        # SMEM scalar

    bt = _pick_batch_tile(B, D, b_tile)
    grid_b = _cdiv(B, bt)
    out_cols = grid_b * bt         # padded lane-dense output; sliced back below

    cost = pl.CostEstimate(
        flops=2 * B * D * HIDDEN + 2 * B * HIDDEN * 8,
        transcendentals=B,
        bytes_accessed=(B * D * x.dtype.itemsize + out_cols * 4         # x + out
                        + D * HIDDEN * 2 + HIDDEN * 4                   # w1 + b1
                        + 8 * HIDDEN * 4 + 4),                          # w2 + b2
    )

    out = pl.pallas_call(
        _mlp_kernel,
        out_shape=jax.ShapeDtypeStruct((1, out_cols), jnp.float32),
        grid=(grid_b,),
        in_specs=[
            pl.BlockSpec((bt, D), lambda i: (i, 0)),            # x: streamed f32 tiles
            pl.BlockSpec((D, HIDDEN), lambda i: (0, 0)),        # w1: VMEM-resident
            pl.BlockSpec((1, HIDDEN), lambda i: (0, 0)),        # b1
            pl.BlockSpec((8, HIDDEN), lambda i: (0, 0)),        # w2 (row 0 real)
            pl.BlockSpec(memory_space=pltpu.MemorySpace.SMEM),  # b2 scalar
        ],
        out_specs=pl.BlockSpec((1, bt), lambda i: (0, i)),      # lane-dense output
        compiler_params=pltpu.CompilerParams(
            dimension_semantics=("parallel",),
            vmem_limit_bytes=32 * 1024 * 1024),
        cost_estimate=cost,
    )(x, w1, b1, w2, b2)
    return out[0, :B].reshape(B, 1)


def _init_params(key, input_size, hidden=HIDDEN):
    # Mimics nn.Linear's uniform(-1/sqrt(fan_in), 1/sqrt(fan_in)) init.
    k1, k2, k3, k4 = jax.random.split(key, 4)
    bound1 = 1.0 / jnp.sqrt(jnp.float32(input_size))
    bound2 = 1.0 / jnp.sqrt(jnp.float32(hidden))
    fc1_w = jax.random.uniform(k1, (hidden, input_size), jnp.float32, -bound1, bound1)
    fc1_b = jax.random.uniform(k2, (hidden,), jnp.float32, -bound1, bound1)
    fc2_w = jax.random.uniform(k3, (1, hidden), jnp.float32, -bound2, bound2)
    fc2_b = jax.random.uniform(k4, (1,), jnp.float32, -bound2, bound2)
    return fc1_w, fc1_b, fc2_w, fc2_b


def _reference(x, fc1_w, fc1_b, fc2_w, fc2_b):
    h = jnp.maximum(x @ fc1_w.T + fc1_b, 0.0)
    return jax.nn.sigmoid(h @ fc2_w.T + fc2_b)


if __name__ == "__main__":
    key = jax.random.PRNGKey(0)
    kx, kp, kx2 = jax.random.split(key, 3)

    input_size = 64  # graph-feature vector size fed to the domain classifier
    fc1_w, fc1_b, fc2_w, fc2_b = _init_params(kp, input_size)

    # Small batch: single full-extent block (bt == B == 8).
    x = jax.random.normal(kx, (8, input_size), jnp.float32)
    out = jax.block_until_ready(
        domain_graph_classifier(x, fc1_w, fc1_b, fc2_w, fc2_b))
    ref = _reference(x, fc1_w, fc1_b, fc2_w, fc2_b)
    assert out.shape == (8, 1)
    # bf16 fc1 + approx reciprocal -> compare against f32 reference loosely.
    assert jnp.max(jnp.abs(out - ref)) < 2e-2, "mismatch vs reference (small batch)"

    # Ragged batch forcing a multi-step grid with a partial tail block (no pad copy).
    x2 = jax.random.normal(kx2, (300, input_size), jnp.float32)
    out2 = jax.block_until_ready(
        domain_graph_classifier(x2, fc1_w, fc1_b, fc2_w, fc2_b, b_tile=128))
    ref2 = _reference(x2, fc1_w, fc1_b, fc2_w, fc2_b)
    assert out2.shape == (300, 1)
    assert jnp.max(jnp.abs(out2 - ref2)) < 2e-2, "mismatch vs reference (tiled batch)"

    print("KERNEL_OK")
</pallas_src>

<mosaic_0001>
module attributes {stable_mosaic.version = 11 : i64} {
  func.func @_mlp_kernel(%arg0: i32, %arg1: memref<8x64xf32, #tpu.memory_space<vmem>>, %arg2: memref<64x128xbf16, #tpu.memory_space<vmem>>, %arg3: memref<1x128xf32, #tpu.memory_space<vmem>>, %arg4: memref<8x128xf32, #tpu.memory_space<vmem>>, %arg5: memref<1x1xf32, #tpu.memory_space<smem>>, %arg6: memref<1x8xf32, #tpu.memory_space<vmem>>) attributes {dimension_semantics = [#tpu.dimension_semantics<parallel>], iteration_bounds = array<i64: 1>, scalar_prefetch = 0 : i64, scratch_operands = 0 : i64, tpu.core_type = #tpu.core_type<tc>, window_params = [{transform_indices = @transform_0, window_bounds = array<i64: 8, 64>}, {pipeline_mode = #tpu.pipeline_mode<synchronous>, transform_indices = @transform_1, window_bounds = array<i64: 64, 128>}, {pipeline_mode = #tpu.pipeline_mode<synchronous>, transform_indices = @transform_2, window_bounds = array<i64: 1, 128>}, {pipeline_mode = #tpu.pipeline_mode<synchronous>, transform_indices = @transform_3, window_bounds = array<i64: 8, 128>}, {transform_indices = @transform_4, window_bounds = array<i64: 1, 1>}, {transform_indices = @transform_5, window_bounds = array<i64: 1, 8>}]} {
    %c0 = arith.constant 0 : index
    %c0_0 = arith.constant 0 : index
    %0 = vector.load %arg1[%c0, %c0_0] : memref<8x64xf32, #tpu.memory_space<vmem>>, vector<8x64xf32>
    %1 = arith.truncf %0 : vector<8x64xf32> to vector<8x64xbf16>
    %c0_1 = arith.constant 0 : index
    %c0_2 = arith.constant 0 : index
    %2 = vector.load %arg2[%c0_1, %c0_2] : memref<64x128xbf16, #tpu.memory_space<vmem>>, vector<64x128xbf16>
    %cst = arith.constant dense<0.000000e+00> : vector<8x128xf32>
    %3 = tpu.matmul %1, %2, %cst {dimension_numbers = #tpu.dot_dimension_numbers<[1], [0], [0], [1], [0, 0, 1, 1], [], []>} : vector<8x64xbf16>, vector<64x128xbf16>, vector<8x128xf32> -> vector<8x128xf32>
    %c0_3 = arith.constant 0 : index
    %c0_4 = arith.constant 0 : index
    %4 = vector.load %arg3[%c0_3, %c0_4] : memref<1x128xf32, #tpu.memory_space<vmem>>, vector<1x128xf32>
    %5 = vector.broadcast %4 : vector<1x128xf32> to vector<8x128xf32>
    %6 = arith.addf %3, %5 : vector<8x128xf32>
    %cst_5 = arith.constant 0.000000e+00 : f32
    %7 = vector.broadcast %cst_5 : f32 to vector<8x128xf32>
    %8 = arith.maximumf %6, %7 : vector<8x128xf32>
    %c0_6 = arith.constant 0 : index
    %c0_7 = arith.constant 0 : index
    %9 = vector.load %arg4[%c0_6, %c0_7] : memref<8x128xf32, #tpu.memory_space<vmem>>, vector<8x128xf32>
    %cst_8 = arith.constant dense<0.000000e+00> : vector<8x8xf32>
    %10 = tpu.matmul %9, %8, %cst_8 {dimension_numbers = #tpu.dot_dimension_numbers<[1], [1], [0], [0], [0, 0, 1, 0], [], []>} : vector<8x128xf32>, vector<8x128xf32>, vector<8x8xf32> -> vector<8x8xf32>
    %11 = vector.extract_strided_slice %10 {offsets = [0, 0], sizes = [1, 8], strides = [1, 1]} : vector<8x8xf32> to vector<1x8xf32>
    %c0_9 = arith.constant 0 : index
    %c0_10 = arith.constant 0 : index
    %12 = memref.load %arg5[%c0_9, %c0_10] : memref<1x1xf32, #tpu.memory_space<smem>>
    %13 = vector.broadcast %12 : f32 to vector<1x8xf32>
    %14 = arith.addf %11, %13 : vector<1x8xf32>
    %cst_11 = arith.constant 0.000000e+00 : f32
    %15 = vector.broadcast %cst_11 : f32 to vector<1x8xf32>
    %16 = arith.subf %15, %14 : vector<1x8xf32>
    %17 = math.exp %16 : vector<1x8xf32>
    %cst_12 = arith.constant 1.000000e+00 : f32
    %18 = vector.broadcast %cst_12 : f32 to vector<1x8xf32>
    %19 = arith.addf %18, %17 : vector<1x8xf32>
    %20 = tpu.reciprocal %19 {approx = true} : vector<1x8xf32> -> vector<1x8xf32>
    %c0_13 = arith.constant 0 : index
    %c0_14 = arith.constant 0 : index
    %21 = vector.load %arg6[%c0_13, %c0_14] : memref<1x8xf32, #tpu.memory_space<vmem>>, vector<1x8xf32>
    tpu.vector_store %arg6[%c0_13, %c0_14], %20 {strides = array<i32>} : memref<1x8xf32, #tpu.memory_space<vmem>>, vector<1x8xf32>,
    return
  }
  func.func @transform_0(%arg0: i32) -> (i32, i32) {
    %c0_i32 = arith.constant 0 : i32
    %c0_i32_0 = arith.constant 0 : i32
    return %arg0, %c0_i32 : i32, i32
  }
  func.func @transform_1(%arg0: i32) -> (i32, i32) {
    %c0_i32 = arith.constant 0 : i32
    %c0_i32_0 = arith.constant 0 : i32
    %c0_i32_1 = arith.constant 0 : i32
    return %c0_i32, %c0_i32_0 : i32, i32
  }
  func.func @transform_2(%arg0: i32) -> (i32, i32) {
    %c0_i32 = arith.constant 0 : i32
    %c0_i32_0 = arith.constant 0 : i32
    %c0_i32_1 = arith.constant 0 : i32
    return %c0_i32, %c0_i32_0 : i32, i32
  }
  func.func @transform_3(%arg0: i32) -> (i32, i32) {
    %c0_i32 = arith.constant 0 : i32
    %c0_i32_0 = arith.constant 0 : i32
    %c0_i32_1 = arith.constant 0 : i32
    return %c0_i32, %c0_i32_0 : i32, i32
  }
  func.func @transform_4(%arg0: i32) -> (i32, i32) {
    %c0_i32 = arith.constant 0 : i32
    %c0_i32_0 = arith.constant 0 : i32
    %c0_i32_1 = arith.constant 0 : i32
    return %c0_i32, %c0_i32_0 : i32, i32
  }
  func.func @transform_5(%arg0: i32) -> (i32, i32) {
    %c0_i32 = arith.constant 0 : i32
    %c0_i32_0 = arith.constant 0 : i32
    return %c0_i32, %arg0 : i32, i32
  }
}

</mosaic_0001>

<bundles_post_ra>
// kernel: tpu_custom_call.1
= control target key start
LH: loop header
LB: loop body
LE: loop exit
PB: predicated region body
PF: predicated region fallthrough
CT: control target
= control target key end

     0   :  { %11 = vsyncpa [#allocation4], 0  ;;  %s359_s0 = inlined_call_operand.hbm [shape: f32[8,64], index: 0, kind: input, shape index: {}]   ;;  %s360_s1 = inlined_call_operand.hbm [shape: bf16[64,128], index: 1, kind: input, shape index: {}]   ;;  %s361_s2 = inlined_call_operand.vmem [shape: f32[1,128], index: 2, kind: input, shape index: {}]   ;;  %s362_s3 = inlined_call_operand.hbm [shape: f32[8,128], index: 3, kind: input, shape index: {}]   ;;  %s363_s4 = inlined_call_operand.<no memory space> [shape: f32[1,1], index: 4, kind: input, shape index: {}]   ;;  %s364_s5 = inlined_call_operand.hbm [shape: f32[1,8], index: 5, kind: output, shape index: {}]  }
   0x1   :  { %12 = vsyncpa [#allocation7], 0  ;;  %s29_s20 = sshll.u32 %s360_s1, 4  ;;  %s30_s20 = int_to_ptr.hbm [resolvable:$true] %s29_s20 }
   0x2   :  { %13 = vsyncpa [#allocation5], 0  ;;  %s305_s21 = smov [#allocation6]   ;;  %s19_s25 = sshll.u32 %s359_s0, 4  ;;  %s20_s25 = int_to_ptr.hbm [resolvable:$true] %s19_s25 }
   0x3   :  { %s31_s22 = sshll.u32 %s305_s21, 4  ;;  %s306_s26 = smov 64   ;;  %s32_s22 = int_to_ptr.vmem [resolvable:$true] %s31_s22 }
   0x4   :  { %s307_s27 = smov 4   ;;  %s308_s28 = smov [#allocation3]  }
   0x5   :  { %37 = dma.hbm_to_vmem [thread:$0]  %s30_s20, 512, %s32_s22, [#allocation7], %s306_s26, %s306_s26, %s307_s27  }
   0x6   :  { %s21_s29 = sshll.u32 %s308_s28, 4  ;;  %s45_s7 = sshll.u32 %s362_s3, 4  ;;  %s22_s29 = int_to_ptr.vmem [resolvable:$true] %s21_s29  ;;  %s46_s7 = int_to_ptr.hbm [resolvable:$true] %s45_s7 }
   0x7   :  { %24 = dma.hbm_to_vmem [thread:$0]  %s20_s25, 128, %s22_s29, [#allocation4]  }
   0x8   :  { %s309_s1 = smov [#allocation8]  }
   0x9   :  { %s47_s8 = sshll.u32 %s309_s1, 4  ;;  %s48_s8 = int_to_ptr.vmem [resolvable:$true] %s47_s8 }
   0xa   :  { %50 = dma.hbm_to_vmem [thread:$0]  %s46_s7, 128, %s48_s8, [#allocation7]  }
   0xb   :  { %299 = dma.done.wait [#allocation4], 128  }
   0xc   :  { %300 = vsyncadd [#allocation4], 4294967168 }
   0xd   :  { %301 = dma.done.wait [#allocation7], 640  }
   0xe   :  { %302 = vsyncadd [#allocation7], 4294966656  ;;  %v191_v0 = vld [vmem:[#allocation6 + $0x18] sm:$0xff]  ;;  %v190_v1 = vld [vmem:[#allocation6 + $0x10] sm:$0xff]  ;;  %vm104_vm0 = vcmask 523264   ;;  %v144_v12 = vstv %s363_s4  ;;  %s160_s14 = sshll.u32 %s364_s5, 4  ;;  %s161_s14 = int_to_ptr.hbm [resolvable:$true] %s160_s14 }
   0xf   :  { %112 = vmatpush.bf16.msra.mxu0 %v191_v0  ;;  %v189_v2 = vld [vmem:[#allocation6 + $0x8] sm:$0xff]  ;;  %v188_v3 = vld [vmem:[#allocation6] sm:$0xff]  ;;  %v66_v4 = vld [vmem:[#allocation3] sm:$0xff]  ;;  %vm151_vm1 = vcmask 57344  }
  0x10   :  { %v67_v5 = vpack.c.bf16 %v66_v4, %v66_v4  ;;  %v198_v6 = vld [vmem:[%s361_s2] ss:$0 sm:$0xff]  ;;  %v122_v10 = vld [vmem:[#allocation8] sm:$0xff]  ;;  %s310_s2 = smov [#allocation9]  }
  0x11   :  { %s158_s11 = sshll.u32 %s310_s2, 4  ;;  %s159_s11 = int_to_ptr.vmem [resolvable:$true] %s158_s11 }
  0x13   :  { %113 = vmatpush.bf16.msra.mxu0 %v190_v1 }
  0x17   :  { %114 = vmatpush.bf16.msra.mxu0 %v189_v2 }
  0x1b   :  { %115 = vmatpush.bf16.msra.mxu0 %v188_v3 }
  0x1e   :  { %187 = vmatmul.msk.bf16.vlgmr.msra.gmra.mxu0 %vm104_vm0, %v67_v5 }
  0x9b   :  { %v117_v7 = vpop.f32.mrf.mxu0 }
  0x9c   :  { %v118_v8 = vadd.f32 %v198_v6, %v117_v7 }
  0x9e   :  { %v121_v9 = vmax.f32 %v118_v8, 0.0 }
  0xa0   :  { %138 = vmatpush.xpose.msra.mxu1 %v121_v9 }
  0xa3   :  { %v119_v11 = vpop.f32.mrf.mxu0  ;;  %139 = vmatmul.f32.vlgmr.msra.gmra.mxu1 %v122_v10 }
 0x120   :  { %v140_v13 = vpop.f32.mrf.mxu1 }
 0x121   :  { %v145_v14 = vadd.f32 %v144_v12, %v140_v13 }
 0x123   :  { %v146_v15 = vsub.f32 0.0, %v145_v14 }
 0x125   :  { %v147_v16 = vmul.f32 1.442695, %v146_v15 }
 0x127   :  { %199 = vpow2.f32 %v147_v16 }
 0x12d   :  { %v200_v17 = vpop.eup %199 }
 0x12e   :  { %v149_v18 = vadd.f32 1.0, %v200_v17 }
 0x130   :  { %201 = vrcp.f32 %v149_v18 }
 0x136   :  { %v202_v19 = vpop.eup %201 }
 0x137   :  { %152 = vst.msk [vmem:[#allocation9] sm:$0x1] %vm151_vm1, %v202_v19 }
 0x138   :  { %163 = dma.vmem_to_hbm [thread:$0]  %s159_s11, 16, %s161_s14, [#allocation5]  }
 0x139   :  { %303 = dma.done.wait [#allocation5], 16  }
 0x13a   :  { %304 = vsyncadd [#allocation5], 4294967280 }
 0x13b   :  { %168 = vsyncpa [#allocation4], 1 }
 0x13c   :  { %169 = vsyncpa [#allocation7], 1 }
 0x13d   :  { %170 = vsyncpa [#allocation5], 1 }

</bundles_post_ra>
